<compile_context>
chip_gen: v5e
topology: v5e:2x2
jax: 0.10.0
libtpu: 0.0.40
codegen_flags: <defaults>
</compile_context>

<pallas_src>
import jax
import jax.numpy as jnp
from jax.experimental import pallas as pl
from jax.experimental.pallas import tpu as pltpu

SMOOTH = 1e-5
LANES = 128
MAX_TILE_ROWS = 4096          # 4096*128*4B = 2 MiB per f32 input block
VMEM_LIMIT_BYTES = 32 * 1024 * 1024


def _cdiv(a, b):
    return -(-a // b)


def _round_up(a, m):
    return _cdiv(a, m) * m


def _make_dice_kernel(tile_rows, valid_rows_last, last_ragged):
    """Kernel factory; tile_rows / valid_rows_last / last_ragged are static."""

    def _partials(p, t):
        # Reduce over the sublane (row) axis only; cross-lane reduce is deferred
        # to the tiny JAX epilogue. Assemble one (3, LANES) value -> single store.
        inter = jnp.sum(p * t, axis=0, keepdims=True)
        psum = jnp.sum(p, axis=0, keepdims=True)
        tsum = jnp.sum(t, axis=0, keepdims=True)
        return jnp.concatenate([inter, psum, tsum], axis=0)  # (3, LANES)

    def kernel(yp_ref, yt_ref, out_ref):
        # Widen in VMEM: HBM traffic stays in the callers' native dtype.
        p = jax.nn.sigmoid(yp_ref[...].astype(jnp.float32))
        t = yt_ref[...].astype(jnp.float32)

        if not last_ragged:
            out_ref[...] = _partials(p, t)[jnp.newaxis]
        else:
            is_last = pl.program_id(0) == pl.num_programs(0) - 1

            @pl.when(jnp.logical_not(is_last))
            def _():
                # Full tiles: no masking work at all.
                out_ref[...] = _partials(p, t)[jnp.newaxis]

            @pl.when(is_last)
            def _():
                # Only the last tile can have out-of-bounds rows. Local row
                # index only (no global element index -> no int32 overflow).
                row = jax.lax.broadcasted_iota(jnp.int32, (tile_rows, LANES), 0)
                valid = row < valid_rows_last
                # Keep these as SELECTS (not a 0/1-mask multiply): the OOB rows
                # of the ragged block contain unspecified VMEM data (maybe NaN).
                pm = jnp.where(valid, p, 0.0)
                tm = jnp.where(valid, t, 0.0)
                out_ref[...] = _partials(pm, tm)[jnp.newaxis]

    return kernel


def dice_loss(y_pred, y_true, smooth=SMOOTH):
    """Dice loss over same-shape arrays (e.g. NCHW logits / mask). Returns scalar.

    Pass inputs in their narrowest native dtype (bf16 logits, bool/uint8 mask):
    the kernel widens to f32 in VMEM, so pre-casting to f32 only wastes HBM
    bandwidth on this bandwidth-bound op.
    """
    assert y_pred.shape == y_true.shape
    n_elem = int(y_pred.size)
    assert n_elem > 0

    flat_p = jnp.reshape(y_pred, (-1,))  # contiguous row-major -> bitcast
    flat_t = jnp.reshape(y_true, (-1,))

    rows = n_elem // LANES
    n_main = rows * LANES
    tail = n_elem - n_main  # < 128 elements

    inter = jnp.float32(0.0)
    psum = jnp.float32(0.0)
    tsum = jnp.float32(0.0)

    if rows > 0:
        if tail:
            # TODO(synk): this prefix slice may still materialize one copy of the
            # bulk in XLA for non-128-aligned sizes; a ragged 1-D last block would
            # avoid it but is not worth the lowering risk here.
            yp2d = flat_p[:n_main].reshape(rows, LANES)
            yt2d = flat_t[:n_main].reshape(rows, LANES)
        else:
            yp2d = flat_p.reshape(rows, LANES)  # pure bitcast, no copy
            yt2d = flat_t.reshape(rows, LANES)

        # Tile sizing: VMEM budget + >=2 balanced tiles for v7x megacore.
        if rows <= 8:
            tile_rows, n_tiles = rows, 1
        else:
            want_tiles = max(2, _cdiv(rows, MAX_TILE_ROWS))
            tile_rows = min(_round_up(_cdiv(rows, want_tiles), 8), MAX_TILE_ROWS)
            n_tiles = _cdiv(rows, tile_rows)

        valid_rows_last = rows - (n_tiles - 1) * tile_rows
        last_ragged = valid_rows_last != tile_rows

        kernel = _make_dice_kernel(tile_rows, valid_rows_last, last_ragged)

        partials = pl.pallas_call(
            kernel,
            out_shape=jax.ShapeDtypeStruct((n_tiles, 3, LANES), jnp.float32),
            grid_spec=pltpu.PrefetchScalarGridSpec(
                num_scalar_prefetch=0,
                grid=(n_tiles,),
                in_specs=[
                    pl.BlockSpec((tile_rows, LANES), lambda i: (i, 0)),
                    pl.BlockSpec((tile_rows, LANES), lambda i: (i, 0)),
                ],
                out_specs=pl.BlockSpec((1, 3, LANES), lambda i: (i, 0, 0)),
            ),
            compiler_params=pltpu.CompilerParams(
                dimension_semantics=("parallel",),
                vmem_limit_bytes=VMEM_LIMIT_BYTES,
            ),
        )(yp2d, yt2d)

        # Tiny epilogue: cross-lane + cross-tile reduce of (n_tiles, 3, 128).
        sums = jnp.sum(partials, axis=(0, 2))  # (3,)
        inter = inter + sums[0]
        psum = psum + sums[1]
        tsum = tsum + sums[2]

    if tail:
        # <=127 leftover elements: negligible, done in plain JAX.
        p_tail = jax.nn.sigmoid(flat_p[n_main:].astype(jnp.float32))
        t_tail = flat_t[n_main:].astype(jnp.float32)
        inter = inter + jnp.sum(p_tail * t_tail)
        psum = psum + jnp.sum(p_tail)
        tsum = tsum + jnp.sum(t_tail)

    dice = (2.0 * inter + smooth) / (psum + tsum + smooth)
    return 1.0 - dice


def dice_loss_ref(y_pred, y_true, smooth=SMOOTH):
    p = jax.nn.sigmoid(y_pred.astype(jnp.float32))
    t = y_true.astype(jnp.float32)
    inter = jnp.sum(p * t)
    dice = (2.0 * inter + smooth) / (jnp.sum(p) + jnp.sum(t) + smooth)
    return 1.0 - dice


if __name__ == "__main__":
    key = jax.random.PRNGKey(0)
    k1, k2 = jax.random.split(key)
    # NCHW: batch=2, channels=4, spatial=16x16 (segmentation logits / binary mask)
    y_pred = jax.random.normal(k1, (2, 4, 16, 16), dtype=jnp.float32)
    y_true = (jax.random.uniform(k2, (2, 4, 16, 16)) > 0.5).astype(jnp.float32)

    loss = jax.block_until_ready(dice_loss(y_pred, y_true))
    ref = jax.block_until_ready(dice_loss_ref(y_pred, y_true))
    assert abs(float(loss) - float(ref)) < 1e-5, (loss, ref)
    print("KERNEL_OK")
</pallas_src>

<mosaic_0001>
module attributes {stable_mosaic.version = 11 : i64} {
  func.func @kernel(%arg0: i32, %arg1: memref<8x128xf32, #tpu.memory_space<vmem>>, %arg2: memref<8x128xf32, #tpu.memory_space<vmem>>, %arg3: memref<1x3x128xf32, #tpu.memory_space<vmem>>) attributes {dimension_semantics = [#tpu.dimension_semantics<parallel>], iteration_bounds = array<i64: 2>, scalar_prefetch = 0 : i64, scratch_operands = 0 : i64, tpu.core_type = #tpu.core_type<tc>, window_params = [{transform_indices = @transform_0, window_bounds = array<i64: 8, 128>}, {transform_indices = @transform_1, window_bounds = array<i64: 8, 128>}, {transform_indices = @transform_2, window_bounds = array<i64: 1, 3, 128>}]} {
    %c0 = arith.constant 0 : index
    %c0_0 = arith.constant 0 : index
    %0 = vector.load %arg1[%c0, %c0_0] : memref<8x128xf32, #tpu.memory_space<vmem>>, vector<8x128xf32>
    %1 = arith.negf %0 : vector<8x128xf32>
    %2 = math.exp %1 : vector<8x128xf32>
    %cst = arith.constant 1.000000e+00 : f32
    %3 = vector.broadcast %cst : f32 to vector<8x128xf32>
    %4 = arith.addf %3, %2 : vector<8x128xf32>
    %5 = arith.divf %3, %4 : vector<8x128xf32>
    %c0_1 = arith.constant 0 : index
    %c0_2 = arith.constant 0 : index
    %6 = vector.load %arg2[%c0_1, %c0_2] : memref<8x128xf32, #tpu.memory_space<vmem>>, vector<8x128xf32>
    %7 = arith.mulf %5, %6 : vector<8x128xf32>
    %cst_3 = arith.constant dense<0.000000e+00> : vector<128xf32>
    %8 = vector.multi_reduction <add>, %7, %cst_3 [0] : vector<8x128xf32> to vector<128xf32>
    %9 = vector.shape_cast %8 : vector<128xf32> to vector<1x128xf32>
    %cst_4 = arith.constant dense<0.000000e+00> : vector<128xf32>
    %10 = vector.multi_reduction <add>, %5, %cst_4 [0] : vector<8x128xf32> to vector<128xf32>
    %11 = vector.shape_cast %10 : vector<128xf32> to vector<1x128xf32>
    %cst_5 = arith.constant dense<0.000000e+00> : vector<128xf32>
    %12 = vector.multi_reduction <add>, %6, %cst_5 [0] : vector<8x128xf32> to vector<128xf32>
    %13 = vector.shape_cast %12 : vector<128xf32> to vector<1x128xf32>
    %14 = tpu.concatenate %9, %11, %13 in 0 : vector<1x128xf32>, vector<1x128xf32>, vector<1x128xf32> -> vector<3x128xf32>
    %15 = vector.shape_cast %14 : vector<3x128xf32> to vector<1x3x128xf32>
    %c0_6 = arith.constant 0 : index
    %c0_7 = arith.constant 0 : index
    %c0_8 = arith.constant 0 : index
    %16 = vector.load %arg3[%c0_6, %c0_7, %c0_8] : memref<1x3x128xf32, #tpu.memory_space<vmem>>, vector<1x3x128xf32>
    tpu.vector_store %arg3[%c0_6, %c0_7, %c0_8], %15 {strides = array<i32>} : memref<1x3x128xf32, #tpu.memory_space<vmem>>, vector<1x3x128xf32>,
    return
  }
  func.func @transform_0(%arg0: i32) -> (i32, i32) {
    %c0_i32 = arith.constant 0 : i32
    %c0_i32_0 = arith.constant 0 : i32
    return %arg0, %c0_i32 : i32, i32
  }
  func.func @transform_1(%arg0: i32) -> (i32, i32) {
    %c0_i32 = arith.constant 0 : i32
    %c0_i32_0 = arith.constant 0 : i32
    return %arg0, %c0_i32 : i32, i32
  }
  func.func @transform_2(%arg0: i32) -> (i32, i32, i32) {
    %c0_i32 = arith.constant 0 : i32
    %c0_i32_0 = arith.constant 0 : i32
    %c0_i32_1 = arith.constant 0 : i32
    return %arg0, %c0_i32, %c0_i32_0 : i32, i32, i32
  }
}

</mosaic_0001>

<bundles_post_ra>
// kernel: tpu_custom_call.1
= control target key start
LH: loop header
LB: loop body
LE: loop exit
PB: predicated region body
PF: predicated region fallthrough
CT: control target
= control target key end

     0   :  { %7 = vsyncpa [#allocation3], 0  ;;  %s636_s0 = inlined_call_operand.hbm [shape: f32[16,128], index: 0, kind: input, shape index: {}]   ;;  %s637_s1 = inlined_call_operand.hbm [shape: f32[16,128], index: 1, kind: input, shape index: {}]   ;;  %s638_s2 = inlined_call_operand.vmem [shape: f32[2,3,128], index: 2, kind: output, shape index: {}]  }
   0x1   :  { %9 = vsyncpa [#allocation3 + $0x1], 0 }
   0x2   :  { %10 = vsyncpa [#allocation5], 0 }
   0x3   :  { %12 = vsyncpa [#allocation5 + $0x1], 0  ;;  %s510_s9 = smov 0   ;;  %s512_s10 = smov 0  }
   0x4   :  { %s514_s11 = smov 0   ;;  %s516_s12 = smov 0  }
   0x5 LB: > { %s529_s13 = sadd.s32 4294967295, %s493_s12   ;;  %s532_s14 = sadd.s32 1, %s493_s12   ;;  %s493_s12 = sphi %s516_s12, %s646_s12   ;;  %s489_s11 = sphi %s514_s11, %s645_s11   ;;  %s485_s10 = sphi %s512_s10, %s644_s10   ;;  %s481_s9 = sphi %s510_s9, %s643_s9  }
   0x6   : > { %s22_s15 = ssub.s32 %s493_s12, %s532_s14  ;;  %s25_s16 = sadd.s32 1, %s489_s11 }
   0x7   : > { %p23_p0 = scmp.eq.s32.totalorder %s22_s15, 0  ;;  %p32_p1 = scmp.ne.s32.totalorder %s489_s11, %s485_s10 }
   0x8   : > { %p33_p2 = scmp.eq.s32.totalorder %s493_s12, 0  ;;  %p38_p3 = scmp.ne.s32.totalorder %s485_s10, %s481_s9 }
   0x9   : > { %s542_s17 = scalar_select %p23_p0, %s489_s11, %s25_s16  }
   0xa   : > { %p544_p4 = por %p33_p2, %p32_p1  ;;  %p39_p5 = scmp.eq.s32.totalorder %s529_s13, 0 }
   0xb   : > { %p358_p6 = scmp.lt.s32.totalorder %s493_s12, 2  ;;  %s555_s20 = sand.u32 1, %s489_s11  }
   0xc   : > { %p550_p7 = por %p39_p5, %p38_p3  ;;  %s336_s21 = sshll.u32 %s555_s20, 3 }
   0xd   : > { %s337_s22 = sshll.u32 %s493_s12, 3  ;;  %s118_s26 = scalar_lea.vmem [#allocation2], %s336_s21 }
   0xe   : > { %s122_s25 = scalar_lea.hbm %s636_s0, %s337_s22  ;;  %s126_s27 = sshll.u32 %s118_s26, 4  ;;  %s127_s27 = int_to_ptr.vmem [resolvable:$true] %s126_s27 }
   0xf   : > { %s124_s28 = sshll.u32 %s122_s25, 4  ;;  %p564_p8 = pnand %p358_p6, %p544_p4  ;;  %s125_s28 = int_to_ptr.hbm [resolvable:$true] %s124_s28 }
  0x10   : > { %p340_p9 = scmp.ge.s32.totalorder %s493_s12, 1  ;;  %p150_p10 = scmp.lt.s32.totalorder %s493_s12, 3 }
  0x11   : > { %s115_s30 = scalar_lea.sflag [#allocation3], %s555_s20  ;;  %s395_s3 = sshra.s32 %s125_s28, 4  ;;  %s396_s3 = int_to_ptr.hbm [resolvable:$true] %s395_s3 }
  0x12   : > { %s397_s4 = scalar_lea.hbm %s396_s3, 8  ;;  %p399_p12 = pneg %p564_p8 }
  0x13   : > { %p398_p11 = scmp.ne.s32.totalorder %s396_s3, %s397_s4  ;;  %s402_s7 = scalar_lea.hbm %s636_s0, 16 }
  0x14   : > { %p403_p1 = scmp.lt.s32.totalorder %s396_s3, %s636_s0  ;;  %p404_p2 = scmp.lt.s32.totalorder %s402_s7, %s397_s4 }
  0x15   : > { %p400_p13 = pnand %p399_p12, %p398_p11 }
  0x16   : > { %p405_p3 = por %p404_p2, %p403_p1 }
  0x17   : > { %p401_p0 = pneg %p400_p13 }
  0x19   : > { %p406_p4 = pnand %p405_p3, %p401_p0 }
  0x1b   : > { %409 = shalt.err (!%p406_p4)
}
  0x1c   : > { %354 = dma.hbm_to_vmem [thread:$0]  (!%p564_p8), %s125_s28, 128, %s127_s27, %s115_s30  }
  0x1d   : > { %p588_p5 = pnand %p340_p9, %p150_p10  ;;  %s141_s23 = scalar_lea.hbm %s637_s1, %s337_s22 }
  0x1e   : > { %s137_s24 = scalar_lea.vmem [#allocation4], %s336_s21  ;;  %s143_s26 = sshll.u32 %s141_s23, 4  ;;  %s144_s26 = int_to_ptr.hbm [resolvable:$true] %s143_s26 }
  0x1f   : > { %s145_s25 = sshll.u32 %s137_s24, 4  ;;  %s134_s3 = scalar_lea.sflag [#allocation5], %s555_s20  ;;  %s146_s25 = int_to_ptr.vmem [resolvable:$true] %s145_s25 }
  0x20   : > { %s425_s4 = sshra.s32 %s144_s26, 4  ;;  %s432_s28 = scalar_lea.hbm %s637_s1, 16  ;;  %s426_s4 = int_to_ptr.hbm [resolvable:$true] %s425_s4 }
  0x21   : > { %s427_s5 = scalar_lea.hbm %s426_s4, 8  ;;  %p433_p11 = scmp.lt.s32.totalorder %s426_s4, %s637_s1 }
  0x22   : > { %p428_p6 = scmp.ne.s32.totalorder %s426_s4, %s427_s5  ;;  %p434_p13 = scmp.lt.s32.totalorder %s432_s28, %s427_s5 }
  0x24   : > { %p430_p9 = pnand %p428_p6, %p399_p12  ;;  %p435_p0 = por %p434_p13, %p433_p11 }
  0x26   : > { %p431_p10 = pneg %p430_p9 }
  0x28   : > { %p436_p1 = pnand %p435_p0, %p431_p10 }
  0x2a   : > { %439 = shalt.err (!%p436_p1)
}
  0x2b   : > { %357 = dma.hbm_to_vmem [thread:$0]  (!%p564_p8), %s144_s26, 128, %s146_s25, %s134_s3  }
  0x2c   : > { %154 = sbr.rel (%p588_p5) target bundleno = 98 (0x62), region = 28  ;;  %s156_s20 = sand.u32 (!%p588_p5), 1, %s485_s10  }
  0x2d   : > { %s341_s21 = sshll.u32 (!%p588_p5), %s156_s20, 3  ;;  %s157_s6 = scalar_lea.sflag (!%p588_p5), [#allocation3], %s156_s20 }
  0x2e   : > { %s160_s7 = scalar_lea.vmem (!%p588_p5), [#allocation2], %s341_s21 }
  0x31   : > { %472 = dma.done.wait (%p550_p7), %s157_s6, 128  }
  0x32   : > { %474 = vsyncadd (%p550_p7), %s157_s6, 4294967168  ;;  %s167_s8 = scalar_lea.sflag [#allocation5], %s156_s20  ;;  %s170_s9 = scalar_lea.vmem [#allocation4], %s341_s21 }
  0x33   : > { %476 = dma.done.wait (%p550_p7), %s167_s8, 128  }
  0x34   : > { %478 = vsyncadd (%p550_p7), %s167_s8, 4294967168  ;;  %v200_v0 = vld [vmem:[%s160_s7] sm:$0xff]  ;;  %v220_v6 = vld [vmem:[%s170_s9] sm:$0xff]  ;;  %p196_p7 = scmp.lt.s32.totalorder %s529_s13, 1  ;;  %vm240_vm4 = vcmask 1040384   ;;  %vm242_vm5 = vcmask 1041408  }
  0x35   : > { %v344_v1 = vmul.f32 -1.442695, %v200_v0  ;;  %v234_v8 = vrot.slane %v220_v6, 4 }
  0x36   : > { %s648_s13 = smov (!%p196_p7, %s529_s13), 1 }
  0x37   : > { %391 = vpow2.f32 %v344_v1  ;;  %v235_v13 = vadd.f32 %v234_v8, %v220_v6  ;;  %s343_s19 = sshll.u32 %s648_s13, 2 }
  0x38   : > { %s199_s16 = scalar_lea.vmem %s638_s2, %s343_s19 }
  0x39   : > { %v236_v17 = vrot.slane %v235_v13, 2 }
  0x3b   : > { %v237_v22 = vadd.f32 %v236_v17, %v235_v13 }
  0x3d   : > { %v392_v2 = vpop.eup %391  ;;  %v238_v27 = vrot.slane %v237_v22, 1 }
  0x3e   : > { %v204_v3 = vadd.f32 1.0, %v392_v2 }
  0x3f   : > { %v239_v32 = vadd.f32 %v238_v27, %v237_v22 }
  0x40   : > { %393 = vrcp.f32 %v204_v3  ;;  %v216_v7 = vand.u32 2147483648, %v204_v3  ;;  %vm210_vm0 = vweird.f32 %v204_v3  ;;  %v214_v10 = vand.u32 2147483647, %v204_v3 }
  0x42   : > { %v217_v12 = vor.u32 1.1754944e-38, %v216_v7  ;;  %vm215_vm3 = vcmp.eq.f32.partialorder %v214_v10, 8.507059e+37 }
  0x46   : > { %v394_v4 = vpop.eup %393 }
  0x47   : > { %v206_v5 = vmul.f32 %v394_v4, %v204_v3  ;;  %vm211_vm1 = vweird.f32 %v394_v4 }
  0x48   : > { %vm212_vm2 = vmor %vm210_vm0, %vm211_vm1 }
  0x49   : > { %v207_v9 = vsub.f32 1.0, %v206_v5 }
  0x4b   : > { %v208_v11 = vmul.f32 %v394_v4, %v207_v9 }
  0x4d   : > { %v209_v14 = vadd.f32 %v394_v4, %v208_v11 }
  0x4f   : > { %v213_v15 = vsel %vm212_vm2, %v394_v4, %v209_v14 }
  0x50   : > { %v218_v16 = vsel %vm215_vm3, %v217_v12, %v213_v15 }
  0x51   : > { %v221_v18 = vmul.f32 %v220_v6, %v218_v16  ;;  %v228_v19 = vrot.slane %v218_v16, 4 }
  0x53   : > { %v222_v20 = vrot.slane %v221_v18, 4  ;;  %v229_v21 = vadd.f32 %v228_v19, %v218_v16 }
  0x55   : > { %v223_v23 = vadd.f32 %v222_v20, %v221_v18  ;;  %v230_v24 = vrot.slane %v229_v21, 2 }
  0x57   : > { %v224_v25 = vrot.slane %v223_v23, 2  ;;  %v231_v26 = vadd.f32 %v230_v24, %v229_v21 }
  0x59   : > { %v225_v28 = vadd.f32 %v224_v25, %v223_v23  ;;  %v232_v29 = vrot.slane %v231_v26, 1 }
  0x5b   : > { %v226_v30 = vrot.slane %v225_v28, 1  ;;  %v233_v31 = vadd.f32 %v232_v29, %v231_v26 }
  0x5d   : > { %v227_v33 = vadd.f32 %v226_v30, %v225_v28 }
  0x5f   : > { %v241_v34 = vsel %vm240_vm4, %v227_v33, %v233_v31 }
  0x60   : > { %v243_v35 = vsel %vm242_vm5, %v241_v34, %v239_v32 }
  0x61   : > { %244 = vst [vmem:[%s199_s16] sm:$0x7] %v243_v35 }
  0x62 PF: > { %p15_p8 = scmp.ge.s32.totalorder %s532_s14, 4   ;;  %s643_s9 = smov %s485_s10 }
  0x63   : > { %s644_s10 = smov %s489_s11  ;;  %s645_s11 = smov %s542_s17 }
  0x64   : > { %s646_s12 = smov %s532_s14  ;;  %17 = sbr.rel (!%p15_p8) target bundleno = 5 (0x5), region = 81 }
  0x69   :  { %264 = vsyncpa [#allocation3], 1 }
  0x6a   :  { %266 = vsyncpa [#allocation3 + $0x1], 1 }
  0x6b   :  { %267 = vsyncpa [#allocation5], 1 }
  0x6c   :  { %269 = vsyncpa [#allocation5 + $0x1], 1 }

</bundles_post_ra>
